<compile_context>
chip_gen: v7x
topology: tpu7x:2x2x1
jax: 0.10.0
libtpu: 0.0.40
codegen_flags: <defaults>
</compile_context>

<pallas_src>
import functools

import jax
import jax.numpy as jnp
import numpy as np
from jax.experimental import pallas as pl
from jax.experimental.pallas import tpu as pltpu

LANE_TILE = 256         # lane tile: multiple of 128, MXU-native N on v6e/v7x
IM2COL_MAX_CIN = 32     # at/below this Cin_p, per-tap K is too small for the MXU
VMEM_LIMIT_BYTES = 48 * 1024 * 1024   # sized against v7x's 64 MiB physical VMEM


def _head_kernel(*refs, wp, lane_tile, tiled, use_im2col):
    """One (batch, lane-tile) block; flattened spatial positions on lanes.

    tiled == True:
      refs = (x_cur, x_nxt, w1, b1, w2, b2, o, win[, patch])
        x_cur/x_nxt: (Cin_p, lane_tile)  bf16  current / next flat chunk
        win:         (Cin_p, lane_tile + 2*wp + 2) bf16 scratch (tile + halo)
    tiled == False:
      refs = (x, w1, b1, w2, b2, o[, patch])
        x:           (Cin_p, (H+3)*wp)   bf16  full zero-padded flat plane

    w1: (Cmid, 9*Cin_p) bf16 (im2col path) or (9, Cmid, Cin_p) bf16 (per-tap)
        with the BN scale folded in.
    b1: (Cmid, 1) f32 folded BN bias.   w2: (Cout, Cmid) bf16.   b2: (Cout, 1) f32.
    o:  (Cout, lane_tile) f32 (columns w in {W, W+1} of each row are junk and
        dropped by the wrapper).
    """
    halo = 2 * wp + 2
    if tiled:
        x_cur, x_nxt, w1_ref, b1_ref, w2_ref, b2_ref, o_ref = refs[:7]
        scratch = refs[7:]
        win_ref = scratch[0]
        patch_ref = scratch[1] if use_im2col else None
        # Assemble the lane window (tile + 3x3 halo) from the current and the
        # next input chunk.  All offsets are static: no dynamic lane slicing.
        win_ref[:, :lane_tile] = x_cur[...]
        win_ref[:, lane_tile:] = x_nxt[:, :halo]
        src = win_ref
    else:
        x_ref, w1_ref, b1_ref, w2_ref, b2_ref, o_ref = refs[:6]
        scratch = refs[6:]
        patch_ref = scratch[0] if use_im2col else None
        src = x_ref

    cin_p = src.shape[0]

    if use_im2col:
        # Tiny Cin_p: one MXU contraction with K = 9*Cin_p via a small,
        # per-lane-tile im2col patch (not the full plane).
        for k in range(9):
            dy, dx = divmod(k, 3)
            off = dy * wp + dx
            patch_ref[k * cin_p:(k + 1) * cin_p, :] = src[:, off:off + lane_tile]
        acc = jnp.dot(w1_ref[...], patch_ref[...],
                      preferred_element_type=jnp.float32)
    else:
        # Real sizes: 9 accumulated per-tap dots, no materialized im2col.
        # Misaligned tap slices feed the MXU directly (no VMEM round trip).
        acc = None
        for k in range(9):
            dy, dx = divmod(k, 3)
            off = dy * wp + dx
            d = jnp.dot(w1_ref[k], src[:, off:off + lane_tile],
                        preferred_element_type=jnp.float32)
            acc = d if acc is None else acc + d

    # Folded BN bias + LeakyReLU(0.1) (compare-free), kept in f32.
    mid = acc + b1_ref[...]
    mid = jnp.maximum(mid, 0.1 * mid)

    # 1x1 conv == matmul over channels; output is lane-dense.
    out = jnp.dot(w2_ref[...], mid.astype(jnp.bfloat16),
                  preferred_element_type=jnp.float32)
    o_ref[...] = out + b2_ref[...]


@jax.jit
def yolov3_box_predictor(x_nchw, params):
    """Single Yolov3BoxPredictor head. Input/output are NCHW like PyTorch."""
    w1 = params["conv1_w"]            # (3, 3, Cin, Cmid)  HWIO
    gamma = params["bn_gamma"]
    beta = params["bn_beta"]
    mean = params["bn_mean"]
    var = params["bn_var"]
    eps = params["bn_eps"]
    w2 = params["conv2_w"]            # (Cmid, Cout)
    b2 = params["conv2_b"]            # (Cout,)

    N, Cin, H, W = x_nchw.shape
    Cmid = w1.shape[3]
    Cout = w2.shape[1]

    Cin_p = ((Cin + 15) // 16) * 16   # align channel rows to the bf16 sublane pack
    Wp = W + 2                        # width padded by 1 on each side
    Lin = (H + 3) * Wp                # height padded by (1 top, 2 bottom)
    L = H * Wp                        # flat output length (incl. 2 junk cols/row)
    halo = 2 * Wp + 2                 # max tap offset (bottom-right of 3x3 window)

    use_im2col = Cin_p <= IM2COL_MAX_CIN
    lane_tile = LANE_TILE
    while lane_tile <= halo:          # a tile must always cover the 3x3 halo
        lane_tile += 128
    tiled = L > lane_tile
    if not tiled:
        lane_tile = L
    S = -(-L // lane_tile)            # number of lane tiles
    L_pad = S * lane_tile

    # Fold BN (inference) scale into the 3x3 weights; bias stays separate.
    scale = gamma / jnp.sqrt(var + eps)                                 # (Cmid,)
    b1 = (beta - mean * scale).reshape(Cmid, 1).astype(jnp.float32)
    w1s = (w1 * scale).astype(jnp.float32)                              # (3,3,Cin,Cmid)
    w1s = jnp.pad(w1s, ((0, 0), (0, 0), (0, Cin_p - Cin), (0, 0)))
    if use_im2col:
        # Tap-major (ky,kx,cin) flattening, matching the patch row order.
        w1k = jnp.transpose(w1s, (3, 0, 1, 2)).reshape(Cmid, 9 * Cin_p)
        w1k = w1k.astype(jnp.bfloat16)
        w1_spec = pl.BlockSpec((Cmid, 9 * Cin_p), lambda n, s: (0, 0))
    else:
        # Per-tap slabs (9, Cmid, Cin_p) for the accumulated-dot path.
        w1k = jnp.transpose(w1s, (0, 1, 3, 2)).reshape(9, Cmid, Cin_p)
        w1k = w1k.astype(jnp.bfloat16)
        w1_spec = pl.BlockSpec((9, Cmid, Cin_p), lambda n, s: (0, 0, 0))
    w2t = jnp.transpose(w2, (1, 0)).astype(jnp.bfloat16)                # (Cout, Cmid)
    b2c = b2.reshape(Cout, 1).astype(jnp.float32)

    # Zero-pad channels + spatial, flatten each plane row-major, cast to bf16.
    x = jnp.pad(x_nchw, ((0, 0), (0, Cin_p - Cin), (1, 2), (1, 1)))
    x = x.reshape(N, Cin_p, Lin).astype(jnp.bfloat16)

    scratch = []
    if tiled:
        # Chunk the flat axis into S+1 lane_tile chunks (last one is the halo
        # source for the final tile).  Everything past L + halo is zero pad.
        flat_len = (S + 1) * lane_tile
        if flat_len >= Lin:
            x = jnp.pad(x, ((0, 0), (0, 0), (0, flat_len - Lin)))
        else:
            x = x[:, :, :flat_len]
        assert flat_len >= L_pad + halo        # tap in-bounds invariant
        x_specs = [
            pl.BlockSpec((None, Cin_p, lane_tile), lambda n, s: (n, 0, s)),
            pl.BlockSpec((None, Cin_p, lane_tile), lambda n, s: (n, 0, s + 1)),
        ]
        x_args = (x, x)
        scratch.append(pltpu.VMEM((Cin_p, lane_tile + halo), jnp.bfloat16))
    else:
        assert Lin >= L + halo                 # tap in-bounds invariant
        x_specs = [
            pl.BlockSpec((None, Cin_p, x.shape[2]), lambda n, s: (n, 0, 0)),
        ]
        x_args = (x,)
    if use_im2col:
        scratch.append(pltpu.VMEM((9 * Cin_p, lane_tile), jnp.bfloat16))

    in_specs = x_specs + [
        w1_spec,
        # Constant block indices -> weights/bias are not re-DMA'd per step.
        pl.BlockSpec((Cmid, 1), lambda n, s: (0, 0)),
        pl.BlockSpec((Cout, Cmid), lambda n, s: (0, 0)),
        pl.BlockSpec((Cout, 1), lambda n, s: (0, 0)),
    ]

    kernel = functools.partial(_head_kernel, wp=Wp, lane_tile=lane_tile,
                               tiled=tiled, use_im2col=use_im2col)

    out = pl.pallas_call(
        kernel,
        out_shape=jax.ShapeDtypeStruct((N, Cout, L_pad), jnp.float32),
        grid_spec=pltpu.PrefetchScalarGridSpec(
            num_scalar_prefetch=0,
            grid=(N, S),
            in_specs=in_specs,
            out_specs=pl.BlockSpec((None, Cout, lane_tile),
                                   lambda n, s: (n, 0, s)),
            scratch_shapes=scratch,
        ),
        compiler_params=pltpu.CompilerParams(
            # Both axes independent -> shard across v7x's two TensorCores.
            dimension_semantics=("parallel", "parallel"),
            vmem_limit_bytes=VMEM_LIMIT_BYTES,
            # Let XLA fuse the x pad/reshape/bf16-cast into the pallas_call
            # instead of a separate HBM round trip.
            allow_input_fusion=[True] * len(x_args) + [False] * 4,
        ),
    )(*x_args, w1k, b1, w2t, b2c)

    # Drop the lane-tile overhang and the 2 junk columns per row; result is NCHW.
    return out[:, :, :L].reshape(N, Cout, H, Wp)[:, :, :, :W]


def yolov3_head(xs, head_params):
    """Yolov3Head.forward: one box predictor per input feature map."""
    return [yolov3_box_predictor(x, p) for x, p in zip(xs, head_params)]


def init_head_params(key, in_channels, out_channels, num_classes, num_anchors):
    """Deterministic synthetic parameters for one Yolov3BoxPredictor."""
    cout = num_anchors * (num_classes + 5)
    k1, k2, k3, k4, k5, k6 = jax.random.split(key, 6)
    fan_in = in_channels * 9
    return {
        # Conv2dBNLeakyReLU: 3x3 conv (no bias) + BN(eval) + LeakyReLU(0.1)
        "conv1_w": jax.random.normal(k1, (3, 3, in_channels, out_channels),
                                     jnp.float32) / np.sqrt(fan_in),
        "bn_gamma": 1.0 + 0.1 * jax.random.normal(k2, (out_channels,), jnp.float32),
        "bn_beta": 0.1 * jax.random.normal(k3, (out_channels,), jnp.float32),
        "bn_mean": 0.1 * jax.random.normal(k4, (out_channels,), jnp.float32),
        "bn_var": jnp.abs(1.0 + 0.1 * jax.random.normal(k5, (out_channels,),
                                                        jnp.float32)),
        "bn_eps": 1e-5,
        # conv2: init.normal_(std=0.01), bias = 0  (matches the PyTorch init)
        "conv2_w": 0.01 * jax.random.normal(k6, (out_channels, cout), jnp.float32),
        "conv2_b": jnp.zeros((cout,), jnp.float32),
    }


def _reference_head(x_nchw, p):
    """Pure-JAX f32 reference of one box predictor (for correctness check)."""
    x = jnp.transpose(x_nchw, (0, 2, 3, 1))
    y = jax.lax.conv_general_dilated(
        x, p["conv1_w"], window_strides=(1, 1), padding="SAME",
        dimension_numbers=("NHWC", "HWIO", "NHWC"),
        precision=jax.lax.Precision.HIGHEST)
    scale = p["bn_gamma"] / jnp.sqrt(p["bn_var"] + p["bn_eps"])
    y = y * scale + (p["bn_beta"] - p["bn_mean"] * scale)
    y = jnp.where(y > 0, y, 0.1 * y)
    y = jnp.einsum("nhwc,cd->nhwd", y, p["conv2_w"],
                   precision=jax.lax.Precision.HIGHEST) + p["conv2_b"]
    return jnp.transpose(y, (0, 3, 1, 2))


if __name__ == "__main__":
    # Small Yolov3Head config: 4 feature levels, 3 anchors, 3 classes -> 24 out ch.
    # The 4th level (Cin=128, 16x16) exercises the per-tap (no-im2col) path and
    # the lane-tiled grid; the others exercise the tiny-Cin im2col path and the
    # single-tile path.
    in_features = ["dark2", "dark3", "dark4", "dark5"]
    in_channels = [4, 8, 16, 128]
    out_channels = [8, 16, 32, 64]
    num_classes = 3
    num_anchors = 3
    spatial = [16, 16, 8, 16]
    batch = 2

    key = jax.random.PRNGKey(0)
    keys = jax.random.split(key, 2 * len(in_features))

    xs = []
    params = []
    for i in range(len(in_features)):
        xs.append(jax.random.normal(
            keys[2 * i], (batch, in_channels[i], spatial[i], spatial[i]),
            jnp.float32))
        params.append(init_head_params(
            keys[2 * i + 1], in_channels[i], out_channels[i],
            num_classes, num_anchors))

    results = yolov3_head(xs, params)
    results = [jax.block_until_ready(r) for r in results]

    # Shape + numerical check against a pure-JAX f32 reference.
    # Tolerance accounts for bf16 matmul operands (f32 accumulation).
    cout = num_anchors * (num_classes + 5)
    for i, r in enumerate(results):
        assert r.shape == (batch, cout, spatial[i], spatial[i]), r.shape
        ref = jax.block_until_ready(_reference_head(xs[i], params[i]))
        np.testing.assert_allclose(np.asarray(r), np.asarray(ref),
                                   rtol=2e-2, atol=5e-3)

    print("KERNEL_OK")
</pallas_src>

<mosaic_0001>
module attributes {stable_mosaic.version = 11 : i64} {
  func.func @_head_kernel(%arg0: i32, %arg1: i32, %arg2: memref<1x16x256xbf16, #tpu.memory_space<vmem>>, %arg3: memref<1x16x256xbf16, #tpu.memory_space<vmem>>, %arg4: memref<8x144xbf16, #tpu.memory_space<vmem>>, %arg5: memref<8x1xf32, #tpu.memory_space<vmem>>, %arg6: memref<24x8xbf16, #tpu.memory_space<vmem>>, %arg7: memref<24x1xf32, #tpu.memory_space<vmem>>, %arg8: memref<1x24x256xf32, #tpu.memory_space<vmem>>, %arg9: memref<16x294xbf16, #tpu.memory_space<vmem>>, %arg10: memref<144x256xbf16, #tpu.memory_space<vmem>>) attributes {dimension_semantics = [#tpu.dimension_semantics<parallel>, #tpu.dimension_semantics<parallel>], iteration_bounds = array<i64: 2, 2>, scalar_prefetch = 0 : i64, scratch_operands = 2 : i64, tpu.core_type = #tpu.core_type<tc>, window_params = [{transform_indices = @transform_0, window_bounds = array<i64: 1, 16, 256>}, {transform_indices = @transform_1, window_bounds = array<i64: 1, 16, 256>}, {pipeline_mode = #tpu.pipeline_mode<synchronous>, transform_indices = @transform_2, window_bounds = array<i64: 8, 144>}, {pipeline_mode = #tpu.pipeline_mode<synchronous>, transform_indices = @transform_3, window_bounds = array<i64: 8, 1>}, {pipeline_mode = #tpu.pipeline_mode<synchronous>, transform_indices = @transform_4, window_bounds = array<i64: 24, 8>}, {pipeline_mode = #tpu.pipeline_mode<synchronous>, transform_indices = @transform_5, window_bounds = array<i64: 24, 1>}, {transform_indices = @transform_6, window_bounds = array<i64: 1, 24, 256>}]} {
    %c0 = arith.constant 0 : index
    %c0_0 = arith.constant 0 : index
    %c0_1 = arith.constant 0 : index
    %0 = vector.load %arg2[%c0, %c0_0, %c0_1] : memref<1x16x256xbf16, #tpu.memory_space<vmem>>, vector<1x16x256xbf16>
    %1 = vector.shape_cast %0 : vector<1x16x256xbf16> to vector<16x256xbf16>
    %c0_2 = arith.constant 0 : index
    %c0_3 = arith.constant 0 : index
    %2 = vector.load %arg9[%c0_2, %c0_3] : memref<16x294xbf16, #tpu.memory_space<vmem>>, vector<16x256xbf16>
    tpu.vector_store %arg9[%c0_2, %c0_3], %1 {strides = array<i32>} : memref<16x294xbf16, #tpu.memory_space<vmem>>, vector<16x256xbf16>,
    %c0_4 = arith.constant 0 : index
    %c0_5 = arith.constant 0 : index
    %c0_6 = arith.constant 0 : index
    %3 = vector.load %arg3[%c0_4, %c0_5, %c0_6] : memref<1x16x256xbf16, #tpu.memory_space<vmem>>, vector<1x16x38xbf16>
    %4 = vector.shape_cast %3 : vector<1x16x38xbf16> to vector<16x38xbf16>
    %c0_7 = arith.constant 0 : index
    %c256 = arith.constant 256 : index
    %5 = vector.load %arg9[%c0_7, %c256] : memref<16x294xbf16, #tpu.memory_space<vmem>>, vector<16x38xbf16>
    tpu.vector_store %arg9[%c0_7, %c256], %4 {strides = array<i32>} : memref<16x294xbf16, #tpu.memory_space<vmem>>, vector<16x38xbf16>,
    %c0_8 = arith.constant 0 : index
    %c0_9 = arith.constant 0 : index
    %6 = vector.load %arg9[%c0_8, %c0_9] : memref<16x294xbf16, #tpu.memory_space<vmem>>, vector<16x256xbf16>
    %c0_10 = arith.constant 0 : index
    %c0_11 = arith.constant 0 : index
    %7 = vector.load %arg10[%c0_10, %c0_11] : memref<144x256xbf16, #tpu.memory_space<vmem>>, vector<16x256xbf16>
    tpu.vector_store %arg10[%c0_10, %c0_11], %6 {strides = array<i32>} : memref<144x256xbf16, #tpu.memory_space<vmem>>, vector<16x256xbf16>,
    %c0_12 = arith.constant 0 : index
    %c1 = arith.constant 1 : index
    %8 = vector.load %arg9[%c0_12, %c1] : memref<16x294xbf16, #tpu.memory_space<vmem>>, vector<16x256xbf16>
    %c16 = arith.constant 16 : index
    %c0_13 = arith.constant 0 : index
    %9 = vector.load %arg10[%c16, %c0_13] : memref<144x256xbf16, #tpu.memory_space<vmem>>, vector<16x256xbf16>
    tpu.vector_store %arg10[%c16, %c0_13], %8 {strides = array<i32>} : memref<144x256xbf16, #tpu.memory_space<vmem>>, vector<16x256xbf16>,
    %c0_14 = arith.constant 0 : index
    %c2 = arith.constant 2 : index
    %10 = vector.load %arg9[%c0_14, %c2] : memref<16x294xbf16, #tpu.memory_space<vmem>>, vector<16x256xbf16>
    %c32 = arith.constant 32 : index
    %c0_15 = arith.constant 0 : index
    %11 = vector.load %arg10[%c32, %c0_15] : memref<144x256xbf16, #tpu.memory_space<vmem>>, vector<16x256xbf16>
    tpu.vector_store %arg10[%c32, %c0_15], %10 {strides = array<i32>} : memref<144x256xbf16, #tpu.memory_space<vmem>>, vector<16x256xbf16>,
    %c0_16 = arith.constant 0 : index
    %c18 = arith.constant 18 : index
    %12 = vector.load %arg9[%c0_16, %c18] : memref<16x294xbf16, #tpu.memory_space<vmem>>, vector<16x256xbf16>
    %c48 = arith.constant 48 : index
    %c0_17 = arith.constant 0 : index
    %13 = vector.load %arg10[%c48, %c0_17] : memref<144x256xbf16, #tpu.memory_space<vmem>>, vector<16x256xbf16>
    tpu.vector_store %arg10[%c48, %c0_17], %12 {strides = array<i32>} : memref<144x256xbf16, #tpu.memory_space<vmem>>, vector<16x256xbf16>,
    %c0_18 = arith.constant 0 : index
    %c19 = arith.constant 19 : index
    %14 = vector.load %arg9[%c0_18, %c19] : memref<16x294xbf16, #tpu.memory_space<vmem>>, vector<16x256xbf16>
    %c64 = arith.constant 64 : index
    %c0_19 = arith.constant 0 : index
    %15 = vector.load %arg10[%c64, %c0_19] : memref<144x256xbf16, #tpu.memory_space<vmem>>, vector<16x256xbf16>
    tpu.vector_store %arg10[%c64, %c0_19], %14 {strides = array<i32>} : memref<144x256xbf16, #tpu.memory_space<vmem>>, vector<16x256xbf16>,
    %c0_20 = arith.constant 0 : index
    %c20 = arith.constant 20 : index
    %16 = vector.load %arg9[%c0_20, %c20] : memref<16x294xbf16, #tpu.memory_space<vmem>>, vector<16x256xbf16>
    %c80 = arith.constant 80 : index
    %c0_21 = arith.constant 0 : index
    %17 = vector.load %arg10[%c80, %c0_21] : memref<144x256xbf16, #tpu.memory_space<vmem>>, vector<16x256xbf16>
    tpu.vector_store %arg10[%c80, %c0_21], %16 {strides = array<i32>} : memref<144x256xbf16, #tpu.memory_space<vmem>>, vector<16x256xbf16>,
    %c0_22 = arith.constant 0 : index
    %c36 = arith.constant 36 : index
    %18 = vector.load %arg9[%c0_22, %c36] : memref<16x294xbf16, #tpu.memory_space<vmem>>, vector<16x256xbf16>
    %c96 = arith.constant 96 : index
    %c0_23 = arith.constant 0 : index
    %19 = vector.load %arg10[%c96, %c0_23] : memref<144x256xbf16, #tpu.memory_space<vmem>>, vector<16x256xbf16>
    tpu.vector_store %arg10[%c96, %c0_23], %18 {strides = array<i32>} : memref<144x256xbf16, #tpu.memory_space<vmem>>, vector<16x256xbf16>,
    %c0_24 = arith.constant 0 : index
    %c37 = arith.constant 37 : index
    %20 = vector.load %arg9[%c0_24, %c37] : memref<16x294xbf16, #tpu.memory_space<vmem>>, vector<16x256xbf16>
    %c112 = arith.constant 112 : index
    %c0_25 = arith.constant 0 : index
    %21 = vector.load %arg10[%c112, %c0_25] : memref<144x256xbf16, #tpu.memory_space<vmem>>, vector<16x256xbf16>
    tpu.vector_store %arg10[%c112, %c0_25], %20 {strides = array<i32>} : memref<144x256xbf16, #tpu.memory_space<vmem>>, vector<16x256xbf16>,
    %c0_26 = arith.constant 0 : index
    %c38 = arith.constant 38 : index
    %22 = vector.load %arg9[%c0_26, %c38] : memref<16x294xbf16, #tpu.memory_space<vmem>>, vector<16x256xbf16>
    %c128 = arith.constant 128 : index
    %c0_27 = arith.constant 0 : index
    %23 = vector.load %arg10[%c128, %c0_27] : memref<144x256xbf16, #tpu.memory_space<vmem>>, vector<16x256xbf16>
    tpu.vector_store %arg10[%c128, %c0_27], %22 {strides = array<i32>} : memref<144x256xbf16, #tpu.memory_space<vmem>>, vector<16x256xbf16>,
    %c0_28 = arith.constant 0 : index
    %c0_29 = arith.constant 0 : index
    %24 = vector.load %arg4[%c0_28, %c0_29] : memref<8x144xbf16, #tpu.memory_space<vmem>>, vector<8x144xbf16>
    %c0_30 = arith.constant 0 : index
    %c0_31 = arith.constant 0 : index
    %25 = vector.load %arg10[%c0_30, %c0_31] : memref<144x256xbf16, #tpu.memory_space<vmem>>, vector<144x256xbf16>
    %cst = arith.constant dense<0.000000e+00> : vector<8x256xf32>
    %26 = tpu.matmul %24, %25, %cst {dimension_numbers = #tpu.dot_dimension_numbers<[1], [0], [0], [1], [0, 0, 1, 1], [], []>} : vector<8x144xbf16>, vector<144x256xbf16>, vector<8x256xf32> -> vector<8x256xf32>
    %c0_32 = arith.constant 0 : index
    %c0_33 = arith.constant 0 : index
    %27 = vector.load %arg5[%c0_32, %c0_33] : memref<8x1xf32, #tpu.memory_space<vmem>>, vector<8x1xf32>
    %28 = vector.broadcast %27 : vector<8x1xf32> to vector<8x256xf32>
    %29 = arith.addf %26, %28 : vector<8x256xf32>
    %cst_34 = arith.constant 1.000000e-01 : f32
    %30 = vector.broadcast %cst_34 : f32 to vector<8x256xf32>
    %31 = arith.mulf %30, %29 : vector<8x256xf32>
    %32 = arith.maximumf %29, %31 : vector<8x256xf32>
    %c0_35 = arith.constant 0 : index
    %c0_36 = arith.constant 0 : index
    %33 = vector.load %arg6[%c0_35, %c0_36] : memref<24x8xbf16, #tpu.memory_space<vmem>>, vector<24x8xbf16>
    %34 = arith.truncf %32 : vector<8x256xf32> to vector<8x256xbf16>
    %cst_37 = arith.constant dense<0.000000e+00> : vector<24x256xf32>
    %35 = tpu.matmul %33, %34, %cst_37 {dimension_numbers = #tpu.dot_dimension_numbers<[1], [0], [0], [1], [0, 0, 1, 1], [], []>} : vector<24x8xbf16>, vector<8x256xbf16>, vector<24x256xf32> -> vector<24x256xf32>
    %c0_38 = arith.constant 0 : index
    %c0_39 = arith.constant 0 : index
    %36 = vector.load %arg7[%c0_38, %c0_39] : memref<24x1xf32, #tpu.memory_space<vmem>>, vector<24x1xf32>
    %37 = vector.broadcast %36 : vector<24x1xf32> to vector<24x256xf32>
    %38 = arith.addf %35, %37 : vector<24x256xf32>
    %c0_40 = arith.constant 0 : index
    %c0_41 = arith.constant 0 : index
    %c0_42 = arith.constant 0 : index
    %39 = vector.load %arg8[%c0_40, %c0_41, %c0_42] : memref<1x24x256xf32, #tpu.memory_space<vmem>>, vector<1x24x256xf32>
    %40 = vector.shape_cast %39 : vector<1x24x256xf32> to vector<24x256xf32>
    %41 = vector.shape_cast %38 : vector<24x256xf32> to vector<1x24x256xf32>
    tpu.vector_store %arg8[%c0_40, %c0_41, %c0_42], %41 {strides = array<i32>} : memref<1x24x256xf32, #tpu.memory_space<vmem>>, vector<1x24x256xf32>,
    return
  }
  func.func @transform_0(%arg0: i32, %arg1: i32) -> (i32, i32, i32) {
    %c0_i32 = arith.constant 0 : i32
    %c0_i32_0 = arith.constant 0 : i32
    return %arg0, %c0_i32, %arg1 : i32, i32, i32
  }
  func.func @transform_1(%arg0: i32, %arg1: i32) -> (i32, i32, i32) {
    %c1_i32 = arith.constant 1 : i32
    %0 = arith.addi %arg1, %c1_i32 : i32
    %c0_i32 = arith.constant 0 : i32
    %c0_i32_0 = arith.constant 0 : i32
    return %arg0, %c0_i32, %0 : i32, i32, i32
  }
  func.func @transform_2(%arg0: i32, %arg1: i32) -> (i32, i32) {
    %c0_i32 = arith.constant 0 : i32
    %c0_i32_0 = arith.constant 0 : i32
    %c0_i32_1 = arith.constant 0 : i32
    return %c0_i32, %c0_i32_0 : i32, i32
  }
  func.func @transform_3(%arg0: i32, %arg1: i32) -> (i32, i32) {
    %c0_i32 = arith.constant 0 : i32
    %c0_i32_0 = arith.constant 0 : i32
    %c0_i32_1 = arith.constant 0 : i32
    return %c0_i32, %c0_i32_0 : i32, i32
  }
  func.func @transform_4(%arg0: i32, %arg1: i32) -> (i32, i32) {
    %c0_i32 = arith.constant 0 : i32
    %c0_i32_0 = arith.constant 0 : i32
    %c0_i32_1 = arith.constant 0 : i32
    return %c0_i32, %c0_i32_0 : i32, i32
  }
  func.func @transform_5(%arg0: i32, %arg1: i32) -> (i32, i32) {
    %c0_i32 = arith.constant 0 : i32
    %c0_i32_0 = arith.constant 0 : i32
    %c0_i32_1 = arith.constant 0 : i32
    return %c0_i32, %c0_i32_0 : i32, i32
  }
  func.func @transform_6(%arg0: i32, %arg1: i32) -> (i32, i32, i32) {
    %c0_i32 = arith.constant 0 : i32
    %c0_i32_0 = arith.constant 0 : i32
    return %arg0, %c0_i32, %arg1 : i32, i32, i32
  }
}

</mosaic_0001>

<bundles_post_ra>
// kernel: yolov3_box_predictor.2
= control target key start
LH: loop header
LB: loop body
LE: loop exit
PB: predicated region body
PF: predicated region fallthrough
CT: control target
= control target key end

     0   :  { %s1581_s0 = inlined_call_operand.vmem [shape: bf16[8,144], index: 0, kind: input, shape index: {}]   ;;  %s1582_s1 = inlined_call_operand.vmem [shape: f32[8,1], index: 1, kind: input, shape index: {}]   ;;  %s1583_s2 = inlined_call_operand.vmem [shape: bf16[24,8], index: 2, kind: input, shape index: {}]   ;;  %s1584_s3 = inlined_call_operand.vmem [shape: f32[24,1], index: 3, kind: input, shape index: {}]   ;;  %s1585_s4 = inlined_call_operand.vmem [shape: bf16[2,16,342], index: 4, kind: input, shape index: {}]   ;;  %s1586_s5 = inlined_call_operand.<no memory space> [shape: bf16[], index: 5, kind: input, shape index: {}]   ;;  %s1587_s6 = inlined_call_operand.vmem [shape: f32[2,24,512], index: 6, kind: output, shape index: {}]  }
   0x1   :  { %v11_v0 = vstv %s1586_s5 }
   0x2   :  { %v1387_v1 = vunpack.i.l.bf16 %v11_v0 }
   0x3   :  { %s1389_s23 = smov 0   ;;  %s1391_s24 = smov 0  }
   0x4   :  { %s1393_s25 = smov 0   ;;  %s1395_s26 = smov 0  }
   0x5   :  { %s1397_s27 = smov 0   ;;  %s1399_s28 = smov 0  }
   0x6   :  { %s1401_s29 = smov 0  }
   0x7 LB: > { %1595 = sst [smem:[#allocation17_spill]] %s1317_s24  ;;  %s35_s5 = sadd.s32 1, %s1329_s27  ;;  %s1337_s29 = sphi %s1401_s29, %s26_s29   ;;  %s1333_s28 = sphi %s1399_s28, %s1609_s28   ;;  %s1329_s27 = sphi %s1397_s27, %s1608_s27   ;;  %s1325_s26 = sphi %s1395_s26, %s1607_s26   ;;  %s1321_s25 = sphi %s1393_s25, %s1606_s25   ;;  %s1317_s24 = sphi %s1391_s24, %s1605_s24   ;;  %s1313_s23 = sphi %s1389_s23, %s1604_s23  }
   0x8   : > { %1596 = sst [smem:[#allocation18_spill]] %s1329_s27  ;;  %p36_p0 = scmp.ge.s32.totalorder %s35_s5, 2 }
   0x9   : > { %1597 = sst [smem:[#allocation19_spill]] %s1333_s28  ;;  %s38_s30 = sadd.s32 1, %s1333_s28 }
   0xa   : > { %s1137_s7 = sadd.s32 4294967295, %s1337_s29   ;;  %p199_p1 = scmp.ne.s32.totalorder %s1317_s24, %s1313_s23 }
   0xb   : > { %s1611_s5 = smov (%p36_p0, %s35_s5), 0  ;;  %s1613_s30 = smov (!%p36_p0, %s38_s30), %s1333_s28 }
   0xc   : > { %1598 = sst [smem:[#allocation20_spill]] %s1611_s5  ;;  %s185_s8 = ssub.s32 %s1329_s27, %s1611_s5 }
   0xd   : > { %p200_p2 = scmp.eq.s32.totalorder %s1137_s7, 3  ;;  %p40_p3 = scmp.ge.s32.totalorder %s1613_s30, 2 }
   0xe   : > { %p1141_p4 = scmp.ge.s32.totalorder %s1337_s29, 1  ;;  %p288_p6 = scmp.lt.s32.totalorder %s1337_s29, 5 }
   0xf   : > { %p1435_p5 = por %p200_p2, %p199_p1  ;;  %s1615_s30 = smov (%p40_p3, %s1613_s30), 0 }
  0x10   : > { %1600 = sst [smem:[#allocation21_spill]] %s1615_s30  ;;  %p289_p7 = pnand %p1141_p4, %p288_p6 }
  0x11   : > { %s184_s10 = ssub.s32 %s1333_s28, %s1615_s30  ;;  %s189_s12 = sadd.s32 1, %s1317_s24 }
  0x12   : > { %s186_s11 = sor.u32 %s185_s8, %s184_s10  ;;  %292 = sbr.rel (%p289_p7) target bundleno = 701 (0x2bd), region = 44 }
  0x13   : > { %p187_p8 = scmp.eq.s32.totalorder %s186_s11, 0 }
  0x15   : > { %s1446_s13 = scalar_select %p187_p8, %s1317_s24, %s189_s12  }
  0x17   : > { %1601 = sst [smem:[#allocation22_spill]] %s1446_s13 }
  0x19   : > { %s1449_s14 = sshll.u32 %s1321_s25, 1  ;;  %p350_p9 = scmp.lt.s32.totalorder %s1325_s26, 1  ;;  %v410_v2 = vlaneseq  ;;  %v1339_v24 = vmov 0.0   ;;  %vm669_vm6 = vcmask 310272   ;;  %v1524_v48 = vld [vmem:[%s1581_s0] sm:$0xff]  ;;  %vm858_vm7 = vcmask 130048  }
  0x1a   : > { %p352_p10 = scmp.lt.s32.totalorder %s1449_s14, 2  ;;  %s1588_s15 = ssub.s32 2, %s1449_s14  ;;  %v1166_v49 = vcombine.high %v1524_v48, %v1524_v48  ;;  %v1348_v50 = vmov 0   ;;  %v846_v51 = vld [vmem:[%s1582_s1] sm:$0xff]  ;;  %v914_v52 = vld [vmem:[%s1584_s3 + $0x10] sm:$0xff]  ;;  %vm687_vm8 = vcmask 1039360  }
  0x1b   : > { %s1455_s16 = scalar_select %p350_p9, %s1325_s26, 1  ;;  %v1476_v3 = vand.u32 127, %v410_v2  ;;  %1273 = vset.pattern.permute.xlu0 %v1348_v50  ;;  %984 = vmatprep.mubr.bf16.mxu1 %v1348_v50  ;;  %vm706_vm9 = vcmask 1031168   ;;  %vm725_vm10 = vcmask 900096   ;;  %vm744_vm11 = vcmask 891904  }
  0x1c   : > { %s353_s17 = scalar_select %p352_p10, %s1449_s14, 2  ;;  %1167 = vmatprep.mubr.msk.bf16.mxu0 %vm858_vm7, %v1166_v49  ;;  %1274 = vset.pattern.permute.xlu1 %v1348_v50  ;;  %vm763_vm12 = vcmask 883712   ;;  %vm782_vm13 = vcmask 752640   ;;  %vm801_vm14 = vcmask 744448   ;;  %vm820_vm15 = vcmask 736256  }
  0x1d   : > { %s1590_s18 = smul.u32 6, %s1455_s16  ;;  %p391_p11 = scmp.lt.s32.totalorder %s1588_s15, 0 }
  0x1e   : > { %s420_s19 = sadd.s32 1, %s1449_s14  ;;  %s1473_s11 = sshll.u32 %s1321_s25, 8 }
  0x1f   : > { %s355_s20 = sadd.s32 %s1590_s18, %s353_s17  ;;  %s1464_s21 = ssub.s32 2, %s420_s19  ;;  %v412_v4 = vstv %s1473_s11 }
  0x20   : > { %s1143_s22 = sshll.u32 %s355_s20, 2  ;;  %p422_p12 = scmp.lt.s32.totalorder %s1464_s21, 0  ;;  %v413_v7 = vadd.s32 %v412_v4, %v1476_v3  ;;  %v438_v8 = vstv %s1464_s21 }
  0x21   : > { %s1470_s10 = scalar_lea.vmem %s1585_s4, %s1143_s22  ;;  %s1183_s17 = sadd.s32 128, %s1473_s11  ;;  %vm439_vm2 = vcmp.lt.s32.totalorder %v438_v8, 0 }
  0x22   : > { %s392_s12 = scalar_select %p391_p11, 0, 255  ;;  %v445_v5 = vstv %s1183_s17  ;;  %vm414_vm1 = vcmp.lt.s32.totalorder %v413_v7, 342 }
  0x23   : > { %s423_s15 = scalar_select %p422_p12, 0, 255  ;;  %v446_v9 = vadd.s32 %v445_v5, %v1476_v3 }
  0x24   : > { %s393_s30 = sshrl.u32 %s392_s12, 1  ;;  %s1602_s24 = ssub.s32 2, %s1449_s14 }
  0x25   : > { %s394_s19 = sor.u32 %s393_s30, %s392_s12  ;;  %s424_s18 = sshrl.u32 %s423_s15, 1  ;;  %v406_v6 = vstv %s1602_s24  ;;  %vm447_vm3 = vcmp.lt.s32.totalorder %v446_v9, 342 }
  0x26   : > { %s395_s5 = sand.u32 85, %s394_s19  ;;  %s425_s20 = sor.u32 %s424_s18, %s423_s15  ;;  %vm407_vm0 = vcmp.lt.s32.totalorder %v406_v6, 0 }
  0x27   : > { %s396_s7 = sshrl.u32 %s395_s5, 1  ;;  %s426_s22 = sand.u32 85, %s425_s20 }
  0x28   : > { %s397_s25 = sor.u32 %s396_s7, %s395_s5  ;;  %s427_s8 = sshrl.u32 %s426_s22, 1 }
  0x29   : > { %s398_s28 = sand.u32 51, %s397_s25  ;;  %s428_s27 = sor.u32 %s427_s8, %s426_s22 }
  0x2a   : > { %s399_s13 = sshrl.u32 %s398_s28, 2  ;;  %s429_s30 = sand.u32 51, %s428_s27 }
  0x2b   : > { %s400_s12 = sor.u32 %s399_s13, %s398_s28  ;;  %s430_s15 = sshrl.u32 %s429_s30, 2 }
  0x2c   : > { %s401_s5 = sand.u32 15, %s400_s12  ;;  %s431_s18 = sor.u32 %s430_s15, %s429_s30 }
  0x2d   : > { %v402_v10 = vld [vmem:[%s1470_s10] sm:%s401_s5]  ;;  %s432_s17 = sand.u32 15, %s431_s18  ;;  %v1151_v11 = vld [vmem:[%s1470_s10 + $0xc] sm:%s401_s5]  ;;  %s1487_s19 = sadd.s32 2, %s1449_s14 }
  0x2e   : > { %v403_v12 = vunpack.c.l.bf16 %v402_v10  ;;  %v1149_v13 = vld [vmem:[%s1470_s10 + $0x4] sm:%s432_s17]  ;;  %v467_v14 = vunpack.c.l.bf16 %v1151_v11  ;;  %v1153_v15 = vld [vmem:[%s1470_s10 + $0x10] sm:%s432_s17]  ;;  %p375_p13 = scmp.lt.s32.totalorder %s1487_s19, 2  ;;  %s518_s24 = ssub.s32 2, %s1487_s19 }
  0x2f   : > { %v434_v16 = vunpack.c.l.bf16 %v1149_v13  ;;  %v499_v17 = vunpack.c.l.bf16 %v1153_v15  ;;  %p519_p0 = scmp.lt.s32.totalorder %s518_s24, 0  ;;  %s1196_s21 = sadd.s32 256, %s1473_s11  ;;  %v534_v32 = vstv %s518_s24 }
  0x30   : > { %v408_v18 = vsel %vm407_vm0, %v1387_v1, %v403_v12  ;;  %v472_v19 = vsel %vm407_vm0, %v1387_v1, %v467_v14  ;;  %s376_s27 = scalar_select %p375_p13, %s1487_s19, 2  ;;  %v540_v31 = vstv %s1196_s21  ;;  %vm535_vm4 = vcmp.lt.s32.totalorder %v534_v32, 0  ;;  %v913_v32 = vld [vmem:[%s1584_s3 + $0x8] sm:$0xff] }
  0x31   : > { %v415_v20 = vsel %vm414_vm1, %v408_v18, %v1387_v1  ;;  %v440_v21 = vsel %vm439_vm2, %v1387_v1, %v434_v16  ;;  %v479_v22 = vsel %vm414_vm1, %v472_v19, %v1387_v1  ;;  %v505_v23 = vsel %vm439_vm2, %v1387_v1, %v499_v17  ;;  %s520_s28 = scalar_select %p519_p0, 0, 255 }
  0x32   : > { %v416_v25 = vpack.c.bf16 %v1339_v24, %v415_v20  ;;  %v448_v26 = vsel %vm447_vm3, %v440_v21, %v1387_v1  ;;  %v481_v27 = vpack.c.bf16 %v1339_v24, %v479_v22  ;;  %v513_v28 = vsel %vm447_vm3, %v505_v23, %v1387_v1  ;;  %s1603_s10 = smul.u32 6, %s1455_s16  ;;  %s1341_s19 = smov 126  }
  0x33   : > { %v450_v29 = vpack.c.bf16 %v1339_v24, %v448_v26  ;;  %v515_v30 = vpack.c.bf16 %v1339_v24, %v513_v28  ;;  %s521_s13 = sshrl.u32 %s520_s28, 1  ;;  %v541_v33 = vadd.s32 %v540_v31, %v1476_v3  ;;  %s1342_s24 = smov 110   ;;  %v912_v31 = vld [vmem:[%s1584_s3] sm:$0xff]  ;;  %vm945_vm0 = vcmask 1043456  }
  0x34   : > { %418 = vst [vmem:[#allocation15] sm:$0xf] %v416_v25  ;;  %483 = vst [vmem:[#allocation15 + $0x8] sm:$0xf] %v481_v27  ;;  %s378_s20 = sadd.s32 %s1603_s10, %s376_s27  ;;  %s522_s7 = sor.u32 %s521_s13, %s520_s28  ;;  %vm938_vm1 = vcmask 64512  }
  0x35   : > { %452 = vst [vmem:[#allocation15 + $0x4] sm:$0xf] %v450_v29  ;;  %517 = vst [vmem:[#allocation15 + $0xc] sm:$0xf] %v515_v30  ;;  %s523_s22 = sand.u32 85, %s522_s7  ;;  %s1146_s8 = sshll.u32 %s378_s20, 2  ;;  %v1165_v30 = vcombine.low %v1524_v48, %v1524_v48 }
  0x36   : > { %s524_s25 = sshrl.u32 %s523_s22, 1  ;;  %s380_s17 = scalar_lea.vmem %s1585_s4, %s1146_s8  ;;  %vm542_vm5 = vcmp.lt.s32.totalorder %v541_v33, 342  ;;  %v1282_v48 = vld [vmem:[%s1583_s2 + $0x8] ss:$0 sps:$4 sm:$0xff]  }
  0x37   : > { %s525_s30 = sor.u32 %s524_s25, %s523_s22  ;;  %s1340_s27 = smov 127  }
  0x38   : > { %s526_s12 = sand.u32 51, %s525_s30  ;;  %s1343_s28 = smov 109  }
  0x39   : > { %s527_s15 = sshrl.u32 %s526_s12, 2  ;;  %s1344_s13 = smov 108  }
  0x3a   : > { %s528_s11 = sor.u32 %s527_s15, %s526_s12  ;;  %s1345_s21 = smov 92  }
  0x3b   : > { %s529_s16 = sand.u32 15, %s528_s11  ;;  %v1277_v35 = vld [vmem:[#allocation15] ss:$8 sps:$4 sm:$0xff]   ;;  %s1346_s10 = smov 91  }
  0x3c   : > { %v1275_v34 = vld [vmem:[#allocation15 + $0x4] ss:$8 sps:$4 sm:$0xff]   ;;  %v1158_v37 = vld [vmem:[%s380_s17 + $0xc] sm:%s529_s16]  ;;  %681 = vrot.lane.b32.xlu1 %v1277_v35, %s1340_s27  ;;  %s1347_s20 = smov 90  }
  0x3d   : > { %v530_v36 = vld [vmem:[%s380_s17] sm:%s529_s16]  ;;  %683 = vrot.lane.b32.xlu0 %v1275_v34, %s1340_s27  ;;  %v595_v39 = vunpack.c.l.bf16 %v1158_v37  ;;  %862 = vmatprep.subr.bf16.mxu0 %v1275_v34 }
  0x3e   : > { %v531_v38 = vunpack.c.l.bf16 %v530_v36  ;;  %863 = vmatpush1.bf16.msra.mxu0 %v1277_v35 }
  0x3f   : > { %v600_v41 = vsel %vm535_vm4, %v1387_v1, %v595_v39 }
  0x40   : > { %v536_v40 = vsel %vm535_vm4, %v1387_v1, %v531_v38  ;;  %v607_v43 = vsel %vm542_vm5, %v600_v41, %v1387_v1  ;;  %702 = vrot.lane.b32.xlu1 %v1275_v34, %s1341_s19 }
  0x41   : > { %v543_v42 = vsel %vm542_vm5, %v536_v40, %v1387_v1  ;;  %v609_v45 = vpack.c.bf16 %v1339_v24, %v607_v43 }
  0x42   : > { %v544_v44 = vpack.c.bf16 %v1339_v24, %v543_v42 }
  0x43   : > { %611 = vst [vmem:[#allocation16 + $0x8] sm:$0xf] %v609_v45 }
  0x44   : > { %546 = vst [vmem:[#allocation16] sm:$0xf] %v544_v44  ;;  %700 = vrot.lane.b32.xlu1 %v1277_v35, %s1341_s19 }
  0x4b   : > { %v1278_v46 = vld [vmem:[#allocation16] ss:$8 sps:$4 sm:$0xff]  }
  0x4c   : > { %670 = vst.msk [vmem:[#allocation2 + $0x10] sm:$0xff] %vm669_vm6, %v1278_v46 }
  0x53   : > { %v677_v47 = vld [vmem:[#allocation2 + $0x10] sm:$0xff] }
  0x54   : > { %685 = vrot.lane.b32.xlu0 %v677_v47, %s1340_s27  ;;  %723 = vrot.lane.b32.xlu1 %v677_v47, %s1342_s24 }
  0x58   : > { %704 = vrot.lane.b32.xlu0 %v677_v47, %s1341_s19  ;;  %740 = vrot.lane.b32.xlu1 %v1275_v34, %s1343_s28 }
  0x5c   : > { %721 = vrot.lane.b32.xlu0 %v1275_v34, %s1342_s24  ;;  %738 = vrot.lane.b32.xlu1 %v1277_v35, %s1343_s28 }
  0x60   : > { %719 = vrot.lane.b32.xlu0 %v1277_v35, %s1342_s24  ;;  %761 = vrot.lane.b32.xlu1 %v677_v47, %s1344_s13  ;;  %s340_s24 = sand.u32 1, %s1313_s23   ;;  %s1206_s23 = smul.u32 (%p1435_p5), 12, %s1325_s26 }
  0x64   : > { %742 = vrot.lane.b32.xlu0 %v677_v47, %s1343_s28  ;;  %778 = vrot.lane.b32.xlu1 %v1275_v34, %s1345_s21  ;;  %s1204_s28 = smul.u32 48, %s340_s24 }
  0x68   : > { %759 = vrot.lane.b32.xlu0 %v1275_v34, %s1344_s13  ;;  %776 = vrot.lane.b32.xlu1 %v1277_v35, %s1345_s21 }
  0x6c   : > { %757 = vrot.lane.b32.xlu0 %v1277_v35, %s1344_s13  ;;  %799 = vrot.lane.b32.xlu1 %v677_v47, %s1346_s10  ;;  %s342_s13 = scalar_lea.vmem [#allocation14], %s1204_s28 }
  0x70   : > { %780 = vrot.lane.b32.xlu0 %v677_v47, %s1345_s21  ;;  %816 = vrot.lane.b32.xlu1 %v1275_v34, %s1347_s20  ;;  %s1018_s21 = sadd.s32 (%p1435_p5), %s1206_s23, %s1449_s14 }
  0x74   : > { %797 = vrot.lane.b32.xlu0 %v1275_v34, %s1346_s10  ;;  %814 = vrot.lane.b32.xlu1 %v1277_v35, %s1347_s20 }
  0x78   : > { %795 = vrot.lane.b32.xlu0 %v1277_v35, %s1346_s10  ;;  %917 = vperm.xlu1 %1274, %v912_v31   ;;  %s1174_s10 = sshll.u32 (%p1435_p5), %s1018_s21, 3 }
  0x79   : > { %s1020_s22 = scalar_lea.vmem (%p1435_p5), %s1587_s6, %s1174_s10 }
  0x7c   : > { %818 = vrot.lane.b32.xlu0 %v677_v47, %s1347_s20  ;;  %922 = vperm.xlu1 %1274, %v913_v32   ;;  %v1281_v47 = vld [vmem:[%s1583_s2] sm:$0xff]  }
  0x80   : > { %849 = vperm.xlu0 %1273, %v846_v51  }
  0x84   : > { %927 = vperm.xlu0 %1273, %v914_v52  }
  0xae   : > { %v682_v53 = vpop.permute.xlu1 %681 }
  0xaf   : > { %v684_v55 = vpop.permute.xlu0 %683 }
  0xb0   : > { %v688_v60 = vsel %vm687_vm8, %v682_v53, %v684_v55 }
  0xb2   : > { %v703_v54 = vpop.permute.xlu1 %702 }
  0xb6   : > { %v701_v56 = vpop.permute.xlu1 %700 }
  0xb7   : > { %v707_v0 = vsel %vm706_vm9, %v701_v56, %v703_v54 }
  0xc6   : > { %v686_v57 = vpop.permute.xlu0 %685  ;;  %v724_v58 = vpop.permute.xlu1 %723 }
  0xc7   : > { %v689_v59 = vsel %vm687_vm8, %v684_v55, %v686_v57 }
  0xc8   : > { %864 = vmatprep.subr.bf16.mxu0 %v689_v59 }
  0xc9   : > { %865 = vmatpush1.bf16.msra.mxu0 %v688_v60 }
  0xca   : > { %v705_v61 = vpop.permute.xlu0 %704  ;;  %v741_v62 = vpop.permute.xlu1 %740 }
  0xcb   : > { %v708_v63 = vsel %vm706_vm9, %v703_v54, %v705_v61 }
  0xcc   : > { %866 = vmatprep.subr.bf16.mxu0 %v708_v63 }
  0xcd   : > { %867 = vmatpush1.bf16.msra.mxu0 %v707_v0 }
  0xce   : > { %v722_v2 = vpop.permute.xlu0 %721  ;;  %v739_v3 = vpop.permute.xlu1 %738 }
  0xcf   : > { %v727_v4 = vsel %vm725_vm10, %v722_v2, %v724_v58  ;;  %v745_v11 = vsel %vm744_vm11, %v739_v3, %v741_v62 }
  0xd0   : > { %868 = vmatprep.subr.bf16.mxu0 %v727_v4 }
  0xd2   : > { %v720_v5 = vpop.permute.xlu0 %719  ;;  %v762_v6 = vpop.permute.xlu1 %761 }
  0xd3   : > { %v726_v7 = vsel %vm725_vm10, %v720_v5, %v722_v2 }
  0xd4   : > { %869 = vmatpush1.bf16.msra.mxu0 %v726_v7 }
  0xd6   : > { %v743_v8 = vpop.permute.xlu0 %742  ;;  %v779_v9 = vpop.permute.xlu1 %778 }
  0xd7   : > { %v746_v10 = vsel %vm744_vm11, %v741_v62, %v743_v8 }
  0xd8   : > { %870 = vmatprep.subr.bf16.mxu0 %v746_v10 }
  0xd9   : > { %871 = vmatpush1.bf16.msra.mxu0 %v745_v11 }
  0xda   : > { %v760_v12 = vpop.permute.xlu0 %759  ;;  %v777_v14 = vpop.permute.xlu1 %776 }
  0xdb   : > { %v765_v13 = vsel %vm763_vm12, %v760_v12, %v762_v6  ;;  %v783_v20 = vsel %vm782_vm13, %v777_v14, %v779_v9 }
  0xdc   : > { %872 = vmatprep.subr.bf16.mxu0 %v765_v13 }
  0xde   : > { %v758_v15 = vpop.permute.xlu0 %757  ;;  %v800_v17 = vpop.permute.xlu1 %799 }
  0xdf   : > { %v764_v16 = vsel %vm763_vm12, %v758_v15, %v760_v12 }
  0xe0   : > { %873 = vmatpush1.bf16.msra.mxu0 %v764_v16 }
  0xe2   : > { %v781_v18 = vpop.permute.xlu0 %780  ;;  %v817_v23 = vpop.permute.xlu1 %816 }
  0xe3   : > { %v784_v19 = vsel %vm782_vm13, %v779_v9, %v781_v18 }
  0xe4   : > { %874 = vmatprep.subr.bf16.mxu0 %v784_v19 }
  0xe5   : > { %875 = vmatpush1.bf16.msra.mxu0 %v783_v20 }
  0xe6   : > { %v798_v21 = vpop.permute.xlu0 %797  ;;  %v815_v26 = vpop.permute.xlu1 %814 }
  0xe7   : > { %v803_v22 = vsel %vm801_vm14, %v798_v21, %v800_v17  ;;  %v821_v29 = vsel %vm820_vm15, %v815_v26, %v817_v23 }
  0xe8   : > { %876 = vmatprep.subr.bf16.mxu0 %v803_v22 }
  0xea   : > { %v796_v24 = vpop.permute.xlu0 %795 }
  0xeb   : > { %v802_v25 = vsel %vm801_vm14, %v796_v24, %v798_v21 }
  0xec   : > { %877 = vmatpush1.bf16.msra.mxu0 %v802_v25 }
  0xee   : > { %v819_v27 = vpop.permute.xlu0 %818 }
  0xef   : > { %v822_v28 = vsel %vm820_vm15, %v817_v23, %v819_v27 }
  0xf0   : > { %878 = vmatprep.subr.bf16.mxu0 %v822_v28 }
  0xf1   : > { %879 = vmatpush1.bf16.msra.mxu0 %v821_v29 }
  0xf4   : > { %895 = vmatmul.mubr.bf16.vlgmr.msra.gmra.mrb[0].mxu0 %v1165_v30 }
  0xf7   : > { %v918_v49 = vpop.permute.xlu1 %917 }
  0xfb   : > { %v923_v52 = vpop.permute.xlu1 %922 }
  0xff   : > { %v850_v33 = vpop.permute.xlu0 %849 }
 0x103   : > { %v928_v59 = vpop.permute.xlu0 %927 }
 0x1c7   : > { %v896_v34 = vpop.f32.mrb[0].mxu0 }
 0x1c8   : > { %v897_v35 = vadd.f32 %v896_v34, %v850_v33  ;;  %v898_v36 = vpop.f32.mrb[1].mxu0 }
 0x1c9   : > { %v899_v37 = vadd.f32 %v898_v36, %v850_v33  ;;  %v900_v38 = vpop.f32.mrb[2].mxu0 }
 0x1ca   : > { %v903_v39 = vmul.f32 0.1, %v897_v35  ;;  %v901_v40 = vpop.f32.mrb[3].mxu0 }
 0x1cb   : > { %v904_v41 = vmul.f32 0.1, %v899_v37 }
 0x1cc   : > { %v905_v42 = vmax.f32 %v897_v35, %v903_v39 }
 0x1cd   : > { %v906_v43 = vmax.f32 %v899_v37, %v904_v41 }
 0x1ce   : > { %v910_v44 = vpack.c.bf16 %v905_v42, %v905_v42 }
 0x1cf   : > { %v911_v45 = vpack.c.bf16 %v906_v43, %v906_v43 }
 0x1d0   : > { %v947_v46 = vsel %vm945_vm0, %v910_v44, 0 }
 0x1d1   : > { %1170 = vmatprep.subr.msk.bf16.mxu1 %vm945_vm0, %v911_v45 }
 0x1d2   : > { %953 = vmatpush1.bf16.msra.mxu1 %v947_v46 }
 0x1d5   : > { %1171 = vmatmul.mubr.msk.bf16.vlgmr.msra.gmra.mrb[0].mxu1 %vm938_vm1, %v1281_v47 }
 0x1d6   : > { %994 = vmatprep.mubr.bf16.mxu1 %v1348_v50 }
 0x1dd   : > { %1172 = vmatmul.mubr.msk.bf16.gmra.mrb[4].mxu1 %vm938_vm1, %v1282_v48 }
 0x2a8   : > { %v986_v51 = vpop.f32.mrb[0].mxu1 }
 0x2a9   : > { %v987_v53 = vadd.f32 %v986_v51, %v918_v49  ;;  %v988_v54 = vpop.f32.mrb[1].mxu1 }
 0x2aa   : > { %v989_v55 = vadd.f32 %v988_v54, %v918_v49  ;;  %v990_v56 = vpop.f32.mrb[2].mxu1 }
 0x2ab   : > { %1003 = vst [vmem:[%s342_s13] sm:$0xff] %v987_v53  ;;  %v991_v57 = vadd.f32 %v990_v56, %v923_v52  ;;  %v992_v58 = vpop.f32.mrb[3].mxu1 }
 0x2ac   : > { %1004 = vst [vmem:[%s342_s13 + $0x8] sm:$0xff] %v989_v55  ;;  %v993_v50 = vadd.f32 %v992_v58, %v923_v52 }
 0x2ad   : > { %1005 = vst [vmem:[%s342_s13 + $0x10] sm:$0xff] %v991_v57 }
 0x2ae   : > { %1006 = vst [vmem:[%s342_s13 + $0x18] sm:$0xff] %v993_v50  ;;  %1015 = sbr.rel (!%p1435_p5) target bundleno = 701 (0x2bd), region = 48 }
 0x2b0   : > { %v996_v60 = vpop.f32.mrb[4].mxu1 }
 0x2b1   : > { %v997_v61 = vadd.f32 %v996_v60, %v928_v59  ;;  %v998_v62 = vpop.f32.mrb[5].mxu1 }
 0x2b2   : > { %v999_v63 = vadd.f32 %v998_v62, %v928_v59  ;;  %v1000_v0 = vpop.f32.mrb[6].mxu1  ;;  %v1033_v3 = vld [vmem:[%s342_s13] sm:$0xff] (%p1435_p5) }
 0x2b3   : > { %1007 = vst [vmem:[%s342_s13 + $0x20] sm:$0xff] %v997_v61  ;;  %v1001_v2 = vpop.f32.mrb[7].mxu1  ;;  %v1035_v4 = vld [vmem:[%s342_s13 + $0x8] sm:$0xff] (%p1435_p5)  ;;  %1034 = vst [vmem:[%s1020_s22] sm:$0xff] (%p1435_p5), %v1033_v3 }
 0x2b4   : > { %1008 = vst [vmem:[%s342_s13 + $0x28] sm:$0xff] %v999_v63  ;;  %v1037_v5 = vld [vmem:[%s342_s13 + $0x10] sm:$0xff] (%p1435_p5)  ;;  %1036 = vst [vmem:[%s1020_s22 + $0x8] sm:$0xff] (%p1435_p5), %v1035_v4 }
 0x2b5   : > { %v1039_v6 = vld [vmem:[%s342_s13 + $0x18] sm:$0xff]  ;;  %1038 = vst [vmem:[%s1020_s22 + $0x20] sm:$0xff] %v1037_v5 }
 0x2b6   : > { %1040 = vst [vmem:[%s1020_s22 + $0x28] sm:$0xff] %v1039_v6 }
 0x2ba   : > { %v1041_v7 = vld [vmem:[%s342_s13 + $0x20] sm:$0xff] }
 0x2bb   : > { %v1043_v8 = vld [vmem:[%s342_s13 + $0x28] sm:$0xff]  ;;  %1042 = vst [vmem:[%s1020_s22 + $0x40] sm:$0xff] %v1041_v7 }
 0x2bc   : > { %1044 = vst [vmem:[%s1020_s22 + $0x48] sm:$0xff] %v1043_v8 }
 0x2bd PF: > { %s26_s29 = sadd.s32 1, %s1337_s29   ;;  %s1604_s23 = sld [smem:[#allocation17_spill]] }
 0x2be   : > { %p23_p1 = scmp.ge.s32.totalorder %s26_s29, 6   ;;  %s1605_s24 = sld [smem:[#allocation22_spill]] }
 0x2bf   : > { %s1606_s25 = sld [smem:[#allocation18_spill]]  ;;  %s1607_s26 = sld [smem:[#allocation19_spill]] }
 0x2c0   : > { %s1608_s27 = sld [smem:[#allocation20_spill]]  ;;  %s1609_s28 = sld [smem:[#allocation21_spill]] }
 0x2c1   :  { %25 = sbr.rel (!%p23_p1) target bundleno = 7 (0x7), region = 112 }

</bundles_post_ra>
